<compile_context>
chip_gen: v5e
topology: v5e:2x2
jax: 0.10.0
libtpu: 0.0.40
codegen_flags: <defaults>
</compile_context>

<pallas_src>
import jax
import jax.numpy as jnp
from jax.experimental import pallas as pl
from jax.experimental.pallas import tpu as pltpu

IN_FEATURES = 10
OUT_FEATURES = 20
OUT_PAD = 128            # lane-dense output width
IN_AUG = IN_FEATURES + 1  # +1 ones-column that carries the bias
CLAMP_MIN = 0.125
CLAMP_MAX = 10.375
TILE_N = 512             # row tile for the large-batch path (multiple of 8)


def _round_up(x, m):
    return ((x + m - 1) // m) * m


def _linear_clamp_kernel(x_ref, w_ref, o_ref):
    # x_ref: (rows, IN_AUG)  w_ref: (IN_AUG, OUT_PAD)  o_ref: (rows, OUT_PAD)
    y = jnp.dot(x_ref[...], w_ref[...], preferred_element_type=jnp.float32)
    o_ref[...] = jnp.minimum(jnp.maximum(y, CLAMP_MIN), CLAMP_MAX)


def linear_clamp(x, weight, bias, *, tile_n=TILE_N):
    """x: (N, 10) f32, weight: (20, 10) f32 (PyTorch layout), bias: (20,) f32
    -> (N, 20) f32 = clip(x @ weight.T + bias, 0.125, 10.375)."""
    n = x.shape[0]

    # Fold bias into the matmul: augment x with a ones column and W with a
    # bias row; zero-pad the output dim to 128 lanes.
    x_aug = jnp.concatenate(
        [x.astype(jnp.float32), jnp.ones((n, 1), jnp.float32)], axis=1
    )  # (N, IN_AUG)
    w_aug = jnp.zeros((IN_AUG, OUT_PAD), jnp.float32)
    w_aug = w_aug.at[:IN_FEATURES, :OUT_FEATURES].set(
        weight.astype(jnp.float32).T
    )
    w_aug = w_aug.at[IN_FEATURES, :OUT_FEATURES].set(bias.astype(jnp.float32))

    if n <= tile_n:
        # Small batch: single block, no grid machinery at all.
        n_pad = _round_up(n, 8)
        if n_pad != n:
            x_aug = jnp.pad(x_aug, ((0, n_pad - n), (0, 0)))
        out = pl.pallas_call(
            _linear_clamp_kernel,
            out_shape=jax.ShapeDtypeStruct((n_pad, OUT_PAD), jnp.float32),
        )(x_aug, w_aug)
    else:
        # Large batch: tile rows, keep the tiny weight VMEM-resident across
        # steps, shard the batch axis across TensorCores.
        n_pad = _round_up(n, tile_n)
        if n_pad != n:
            x_aug = jnp.pad(x_aug, ((0, n_pad - n), (0, 0)))
        out = pl.pallas_call(
            _linear_clamp_kernel,
            out_shape=jax.ShapeDtypeStruct((n_pad, OUT_PAD), jnp.float32),
            grid=(n_pad // tile_n,),
            in_specs=[
                pl.BlockSpec((tile_n, IN_AUG), lambda i: (i, 0)),
                pl.BlockSpec((IN_AUG, OUT_PAD), lambda i: (0, 0)),
            ],
            out_specs=pl.BlockSpec((tile_n, OUT_PAD), lambda i: (i, 0)),
            compiler_params=pltpu.CompilerParams(
                dimension_semantics=("parallel",)
            ),
        )(x_aug, w_aug)

    return out[:n, :OUT_FEATURES]


if __name__ == "__main__":
    kw, kb, kx, kx2 = jax.random.split(jax.random.PRNGKey(0), 4)

    # Parameters with nn.Linear(10, 20) shapes (PyTorch layout: (OUT, IN)).
    weight = jax.random.normal(kw, (OUT_FEATURES, IN_FEATURES), jnp.float32) * 0.3
    bias = jax.random.normal(kb, (OUT_FEATURES,), jnp.float32) * 0.3

    # Spec input is (24, 10, 1, 1); squeeze trailing singleton dims so the
    # last dim matches Linear's in_features=10.
    x4 = jax.random.normal(kx, (24, IN_FEATURES, 1, 1), jnp.float32)
    x = x4.reshape(24, IN_FEATURES)

    out = jax.block_until_ready(linear_clamp(x, weight, bias))
    ref = jnp.clip(x @ weight.T + bias, CLAMP_MIN, CLAMP_MAX)
    assert out.shape == (24, OUT_FEATURES)
    assert jnp.allclose(out, ref, atol=1e-4, rtol=1e-4)

    # Also exercise the tiled (large-batch) path to validate it end-to-end.
    n_big = 1536
    xb = jax.random.normal(kx2, (n_big, IN_FEATURES), jnp.float32)
    out_big = jax.block_until_ready(linear_clamp(xb, weight, bias))
    ref_big = jnp.clip(xb @ weight.T + bias, CLAMP_MIN, CLAMP_MAX)
    assert out_big.shape == (n_big, OUT_FEATURES)
    assert jnp.allclose(out_big, ref_big, atol=1e-4, rtol=1e-4)

    print("KERNEL_OK")
</pallas_src>

<mosaic_0001>
module attributes {stable_mosaic.version = 11 : i64} {
  func.func @_linear_clamp_kernel(%arg0: memref<24x11xf32, #tpu.memory_space<vmem>>, %arg1: memref<11x128xf32, #tpu.memory_space<vmem>>, %arg2: memref<24x128xf32, #tpu.memory_space<vmem>>) attributes {dimension_semantics = [], scalar_prefetch = 0 : i64, scratch_operands = 0 : i64, tpu.core_type = #tpu.core_type<tc>} {
    %c0 = arith.constant 0 : index
    %c0_0 = arith.constant 0 : index
    %0 = vector.load %arg0[%c0, %c0_0] : memref<24x11xf32, #tpu.memory_space<vmem>>, vector<24x11xf32>
    %c0_1 = arith.constant 0 : index
    %c0_2 = arith.constant 0 : index
    %1 = vector.load %arg1[%c0_1, %c0_2] : memref<11x128xf32, #tpu.memory_space<vmem>>, vector<11x128xf32>
    %cst = arith.constant dense<0.000000e+00> : vector<24x128xf32>
    %2 = tpu.matmul %0, %1, %cst {dimension_numbers = #tpu.dot_dimension_numbers<[1], [0], [0], [1], [0, 0, 1, 1], [], []>} : vector<24x11xf32>, vector<11x128xf32>, vector<24x128xf32> -> vector<24x128xf32>
    %cst_3 = arith.constant 1.250000e-01 : f32
    %3 = vector.broadcast %cst_3 : f32 to vector<24x128xf32>
    %4 = arith.maximumf %2, %3 : vector<24x128xf32>
    %cst_4 = arith.constant 1.037500e+01 : f32
    %5 = vector.broadcast %cst_4 : f32 to vector<24x128xf32>
    %6 = arith.minimumf %4, %5 : vector<24x128xf32>
    %c0_5 = arith.constant 0 : index
    %c0_6 = arith.constant 0 : index
    %7 = vector.load %arg2[%c0_5, %c0_6] : memref<24x128xf32, #tpu.memory_space<vmem>>, vector<24x128xf32>
    tpu.vector_store %arg2[%c0_5, %c0_6], %6 {strides = array<i32>} : memref<24x128xf32, #tpu.memory_space<vmem>>, vector<24x128xf32>,
    return
  }
}

</mosaic_0001>

<bundles_post_ra>
// kernel: tpu_custom_call.1
= control target key start
LH: loop header
LB: loop body
LE: loop exit
PB: predicated region body
PF: predicated region fallthrough
CT: control target
= control target key end

     0   :  { %vm27_vm0 = vcmask 1042432   ;;  %vm17_vm1 = vcmask 89088   ;;  %s157_s0 = inlined_call_operand.vmem [shape: f32[24,11], index: 0, kind: input, shape index: {}]   ;;  %s158_s1 = inlined_call_operand.vmem [shape: f32[11,128], index: 1, kind: input, shape index: {}]   ;;  %s159_s2 = inlined_call_operand.hbm [shape: f32[24,128], index: 2, kind: output, shape index: {}]  }
   0x1   :  { %v16_v0 = vld [vmem:[%s158_s1 + $0x8] sm:$0x7]  ;;  %v15_v1 = vld [vmem:[%s158_s1] sm:$0xff]  ;;  %v14_v2 = vld [vmem:[%s157_s0 + $0x10] sm:$0xff] }
   0x2   :  { %89 = vmatpush.msk.msra.mxu2 %vm27_vm0, %v16_v0  ;;  %84 = vmatpush.msk.msra.mxu0 %vm27_vm0, %v16_v0 }
   0x3   :  { %7 = vsyncpa [#allocation3], 0  ;;  %88 = vmatpush.msk.msra.mxu1 %vm27_vm0, %v16_v0  ;;  %v12_v3 = vld [vmem:[%s157_s0] sm:$0xff]  ;;  %v13_v4 = vld [vmem:[%s157_s0 + $0x8] sm:$0xff]  ;;  %s121_s1 = smov [#allocation2]   ;;  %s72_s22 = sshll.u32 %s159_s2, 4  ;;  %s73_s22 = int_to_ptr.hbm [resolvable:$true] %s72_s22 }
   0x4   :  { %91 = vmatpush.msra.mxu2 %v15_v1  ;;  %46 = vmatpush.msra.mxu0 %v15_v1  ;;  %s70_s19 = sshll.u32 %s121_s1, 4  ;;  %s122_s0 = smov 128   ;;  %s71_s19 = int_to_ptr.vmem [resolvable:$true] %s70_s19 }
   0x5   :  { %87 = vmatmul.msk.f32.vlgmr.msra.gmra.mxu2 %vm17_vm1, %v14_v2  ;;  %90 = vmatpush.msra.mxu1 %v15_v1  ;;  %s123_s23 = smov 8  }
   0x6   :  { %85 = vmatmul.msk.f32.vlgmr.msra.gmra.mxu0 %vm17_vm1, %v12_v3  ;;  %86 = vmatmul.msk.f32.vlgmr.msra.gmra.mxu1 %vm17_vm1, %v13_v4 }
  0x83   :  { %v48_v5 = vpop.f32.mrf.mxu0  ;;  %v51_v6 = vpop.f32.mrf.mxu1 }
  0x84   :  { %v57_v7 = vmax.f32 %v48_v5, 0.125  ;;  %v58_v8 = vmax.f32 %v51_v6, 0.125 }
  0x86   :  { %v60_v9 = vmin.f32 %v57_v7, 10.375  ;;  %v61_v10 = vmin.f32 %v58_v8, 10.375 }
  0x88   :  { %63 = vst [vmem:[#allocation2] sm:$0xff] %v60_v9  ;;  %v54_v11 = vpop.f32.mrf.mxu2 }
  0x89   :  { %64 = vst [vmem:[#allocation2 + $0x8] sm:$0xff] %v61_v10  ;;  %v59_v12 = vmax.f32 %v54_v11, 0.125 }
  0x8b   :  { %v62_v13 = vmin.f32 %v59_v12, 10.375 }
  0x8d   :  { %65 = vst [vmem:[#allocation2 + $0x10] sm:$0xff] %v62_v13 }
  0x8e   :  { %78 = dma.vmem_to_hbm [thread:$0]  %s71_s19, 384, %s73_s22, [#allocation3], %s122_s0, %s122_s0, %s123_s23  }
  0x8f   :  { %119 = dma.done.wait [#allocation3], 384  }
  0x90   :  { %120 = vsyncadd [#allocation3], 4294966912 }
  0x91   :  { %83 = vsyncpa [#allocation3], 1 }

</bundles_post_ra>
